<compile_context>
chip_gen: v6e
topology: v6e:2x2x1
jax: 0.10.0
libtpu: 0.0.40
codegen_flags: <defaults>
</compile_context>

<pallas_src>
import functools

import jax
import jax.numpy as jnp
from jax.experimental import pallas as pl
from jax.experimental.pallas import tpu as pltpu


def _round_up(n, m):
    return ((n + m - 1) // m) * m


def _pad2(a, rows, cols):
    return jnp.pad(a, ((0, rows - a.shape[0]), (0, cols - a.shape[1])))


def seq_model_kernel(x_ref, mask_ref, wqkv_ref, bqkv_ref, wo_ref, bo_ref,
                     w1_ref, b1_ref, w2_ref, b2_ref, out_ref,
                     *, seq_len, embed_dim, padded_embed_dim, matmul_dtype,
                     approx_recip):
    S, E, Ep = seq_len, embed_dim, padded_embed_dim
    x2 = x_ref[...]                                   # (Bt*S, E) activation dtype
    Bt = x2.shape[0] // S
    scale = 1.0 / (E ** 0.5)                          # num_heads=1 -> head_dim = E

    # --- fused in-projection: one MXU matmul with lane-dense N = 3*Ep ---
    qkv = (jnp.dot(x2.astype(matmul_dtype), wqkv_ref[...],
                   preferred_element_type=jnp.float32)
           + bqkv_ref[...])                           # (Bt*S, 3*Ep) f32
    qkv3 = qkv.reshape(Bt, S, 3 * Ep)                 # free view when S % 8 == 0
    q = qkv3[:, :, :Ep]                               # slices on 128-lane boundaries
    k = qkv3[:, :, Ep:2 * Ep]
    v = qkv3[:, :, 2 * Ep:]

    # --- scaled dot-product attention (f32 softmax, MXU-dtype matmuls) ---
    # Padded columns of q/k are exactly zero, so contracting over Ep == over E.
    scores = jnp.einsum('bqe,bke->bqk',
                        q.astype(matmul_dtype), k.astype(matmul_dtype),
                        preferred_element_type=jnp.float32) * scale   # (Bt, S, S)
    # Additive key-padding bias (0 / -inf), precomputed in the wrapper from f32 x.
    # -inf (not a finite min) keeps PyTorch semantics for fully-padded rows (NaN).
    scores = scores + mask_ref[...][:, None, :]

    m = jnp.max(scores, axis=-1, keepdims=True)
    p = jnp.exp(scores - m)                           # unnormalized attention
    l = jnp.sum(p, axis=-1, keepdims=True)            # (Bt, S, 1)

    ctx = jnp.einsum('bqk,bke->bqe',
                     p.astype(matmul_dtype), v.astype(matmul_dtype),
                     preferred_element_type=jnp.float32)              # (Bt, S, Ep)

    # Softmax denom 1/l and mean-pool 1/S folded into a single per-row factor:
    # one reciprocal per (query) row, one multiply+reduce pass over ctx.
    inv = pl.reciprocal(l * float(S), approx=approx_recip)            # (Bt, S, 1)
    pooled = jnp.sum(ctx * inv, axis=1)               # (Bt, Ep): mean commuted w/ wo

    attn_pooled = (jnp.dot(pooled.astype(matmul_dtype), wo_ref[...],
                           preferred_element_type=jnp.float32)
                   + bo_ref[...])                     # (Bt, Ep)

    # --- MLP head (feature dims lane-padded in the wrapper; math is exact) ---
    h = jnp.maximum(
        jnp.dot(attn_pooled.astype(matmul_dtype), w1_ref[...],
                preferred_element_type=jnp.float32) + b1_ref[...], 0.0)
    out_ref[...] = (jnp.dot(h.astype(matmul_dtype), w2_ref[...],
                            preferred_element_type=jnp.float32) + b2_ref[...])


def _vmem_budgets():
    """Generation-aware per-block activation budget + scoped-VMEM limit."""
    try:
        cap = int(getattr(pltpu.get_tpu_info(), 'vmem_capacity_bytes'))
    except Exception:
        cap = 64 * 1024 * 1024                        # conservative (v7x-sized) fallback
    if cap >= 100 * 1024 * 1024:                      # v5e / v6e: 128 MiB physical
        block_budget = 24 * 1024 * 1024
    else:                                             # v7x: 64 MiB per TensorCore
        block_budget = 8 * 1024 * 1024
    vmem_limit = min((3 * cap) // 4, 96 * 1024 * 1024)
    return block_budget, vmem_limit


def _pick_block_b(B, S, E, Ep, act_bytes, budget):
    # Rough bytes per batch element resident in VMEM at once.
    per_seq = (S * E * act_bytes            # x block
               + S * 3 * Ep * 4             # qkv
               + 2 * S * S * 4              # scores + p
               + S * Ep * 4)                # ctx
    bt = max(1, min(B, budget // max(per_seq, 1)))
    if B >= 16:
        bt = min(bt, B // 2)                # >=2 grid steps: v7x megacore + DMA overlap
    if bt < B:
        bt = max(8, (bt // 8) * 8)          # sublane / MXU-friendly block
        while bt > 8 and B % bt != 0:       # prefer a block that divides B (no ragged tail)
            bt -= 8
        bt = min(bt, B)
    return bt


def sequence_model_pallas(x, params, *, matmul_dtype=jnp.bfloat16, block_b=None):
    """Fused attention + mean-pool + MLP head.

    bf16 operands are the default on every TPU generation (v5e's MXU runs bf16 at
    full rate and the kernel is HBM-bound); pass matmul_dtype=jnp.float32 for the
    exact validation path.  All element-wise math is f32 in either mode.
    """
    B, S, E = x.shape
    H = params['w1'].shape[1]
    O = params['w2'].shape[1]
    Ep = _round_up(E, 128)
    Hp = _round_up(H, 128)
    Op = _round_up(O, 128)
    exact = jnp.dtype(matmul_dtype) == jnp.dtype(jnp.float32)

    # ---------- wrapper-side layout plumbing (keeps the kernel copy-free) ----------
    # Lane-pad every feature dim to a multiple of 128, fuse QKV into one operand.
    w_qkv = jnp.concatenate([_pad2(params['wq'], E, Ep),
                             _pad2(params['wk'], E, Ep),
                             _pad2(params['wv'], E, Ep)], axis=1)     # (E, 3*Ep)
    b_qkv = jnp.concatenate([_pad2(params['bq'], 1, Ep),
                             _pad2(params['bk'], 1, Ep),
                             _pad2(params['bv'], 1, Ep)], axis=1)     # (1, 3*Ep)
    wo = _pad2(params['wo'], Ep, Ep)
    bo = _pad2(params['bo'], 1, Ep)
    w1 = _pad2(params['w1'], Ep, Hp)
    b1 = _pad2(params['b1'], 1, Hp)
    w2 = _pad2(params['w2'], Hp, Op)
    b2 = _pad2(params['b2'], 1, Op)
    # Matmul operands (weights + activations) in the MXU dtype; biases stay f32.
    w_qkv = w_qkv.astype(matmul_dtype)
    wo = wo.astype(matmul_dtype)
    w1 = w1.astype(matmul_dtype)
    w2 = w2.astype(matmul_dtype)
    # Key-padding mask from the ORIGINAL f32 input (bf16 rounding must not flip it),
    # shipped as an additive bias so the kernel never touches x for masking.
    key_pad = ~jnp.any(x != 0.0, axis=2)                              # (B, S) bool
    mask_bias = jnp.where(key_pad, -jnp.inf, 0.0).astype(jnp.float32)
    # Flatten + cast activations outside the kernel (halves the HBM stream in bf16).
    x2 = x.reshape(B * S, E).astype(matmul_dtype)

    # ---------- generation-aware batch tile ----------
    budget, vmem_limit = _vmem_budgets()
    if block_b is None:
        bt = _pick_block_b(B, S, E, Ep, jnp.dtype(matmul_dtype).itemsize, budget)
    else:
        bt = block_b
    grid = (pl.cdiv(B, bt),)

    kernel = functools.partial(seq_model_kernel, seq_len=S, embed_dim=E,
                               padded_embed_dim=Ep, matmul_dtype=matmul_dtype,
                               approx_recip=not exact)

    out_padded = pl.pallas_call(
        kernel,
        out_shape=jax.ShapeDtypeStruct((B, Op), jnp.float32),
        grid=grid,
        in_specs=[
            pl.BlockSpec((bt * S, E), lambda b: (b, 0)),   # activations: tiled on batch
            pl.BlockSpec((bt, S), lambda b: (b, 0)),       # key-padding bias (0 / -inf)
            pl.BlockSpec(w_qkv.shape, lambda b: (0, 0)),   # weights: resident in VMEM
            pl.BlockSpec(b_qkv.shape, lambda b: (0, 0)),
            pl.BlockSpec(wo.shape, lambda b: (0, 0)),
            pl.BlockSpec(bo.shape, lambda b: (0, 0)),
            pl.BlockSpec(w1.shape, lambda b: (0, 0)),
            pl.BlockSpec(b1.shape, lambda b: (0, 0)),
            pl.BlockSpec(w2.shape, lambda b: (0, 0)),
            pl.BlockSpec(b2.shape, lambda b: (0, 0)),
        ],
        out_specs=pl.BlockSpec((bt, Op), lambda b: (b, 0)),
        compiler_params=pltpu.CompilerParams(
            dimension_semantics=("parallel",),
            vmem_limit_bytes=vmem_limit),
    )(x2, mask_bias, w_qkv, b_qkv, wo, bo, w1, b1, w2, b2)

    return out_padded[:, :O]


def sequence_model_ref(x, params):
    """Pure-JAX f32 reference mirroring the PyTorch forward exactly."""
    B, S, E = x.shape
    key_pad = ~jnp.any(x != 0, axis=2)
    q = x @ params['wq'] + params['bq']
    k = x @ params['wk'] + params['bk']
    v = x @ params['wv'] + params['bv']
    scores = jnp.einsum('bqe,bke->bqk', q, k) / jnp.sqrt(E).astype(jnp.float32)
    scores = jnp.where(key_pad[:, None, :], -jnp.inf, scores)
    attn = jax.nn.softmax(scores, axis=-1)
    ctx = jnp.einsum('bqk,bke->bqe', attn, v)
    attn_out = ctx @ params['wo'] + params['bo']
    pooled = jnp.mean(attn_out, axis=1)
    h = jax.nn.relu(pooled @ params['w1'] + params['b1'])
    return h @ params['w2'] + params['b2']


def init_params(key, embedding_dim, output_dim):
    E, O, H = embedding_dim, output_dim, embedding_dim // 2
    ks = jax.random.split(key, 8)
    # nn.MultiheadAttention: in_proj_weight (3E, E), in_proj_bias (3E,),
    #                        out_proj (E, E) + (E,)
    in_proj_w = jax.random.normal(ks[0], (3 * E, E), jnp.float32) * 0.05
    in_proj_b = jax.random.normal(ks[1], (3 * E,), jnp.float32) * 0.05
    out_proj_w = jax.random.normal(ks[2], (E, E), jnp.float32) * 0.05
    out_proj_b = jax.random.normal(ks[3], (E,), jnp.float32) * 0.05
    # fc1: (E//2, E) + (E//2,);  fc2: (O, E//2) + (O,)
    fc1_w = jax.random.normal(ks[4], (H, E), jnp.float32) * 0.05
    fc1_b = jax.random.normal(ks[5], (H,), jnp.float32) * 0.05
    fc2_w = jax.random.normal(ks[6], (O, H), jnp.float32) * 0.05
    fc2_b = jax.random.normal(ks[7], (O,), jnp.float32) * 0.05

    return {
        # pre-transposed to (in, out); biases as (1, out) rows for TPU layout
        'wq': in_proj_w[0:E].T,         'bq': in_proj_b[0:E].reshape(1, E),
        'wk': in_proj_w[E:2 * E].T,     'bk': in_proj_b[E:2 * E].reshape(1, E),
        'wv': in_proj_w[2 * E:3 * E].T, 'bv': in_proj_b[2 * E:3 * E].reshape(1, E),
        'wo': out_proj_w.T,             'bo': out_proj_b.reshape(1, E),
        'w1': fc1_w.T,                  'b1': fc1_b.reshape(1, H),
        'w2': fc2_w.T,                  'b2': fc2_b.reshape(1, O),
    }


if __name__ == "__main__":
    # Small shapes consistent with the module's forward: (batch, seq, embedding_dim)
    B, S, E, O = 2, 8, 32, 16

    key = jax.random.PRNGKey(0)
    kx, kp = jax.random.split(key)
    x = jax.random.normal(kx, (B, S, E), jnp.float32)
    # Zero a couple of trailing positions to exercise the key-padding-mask path.
    x = x.at[0, S - 2:].set(0.0)
    params = init_params(kp, E, O)

    ref = sequence_model_ref(x, params)

    # f32 validation build: exact-dtype path (exact reciprocal), tight tolerance.
    out_f32 = jax.block_until_ready(
        sequence_model_pallas(x, params, matmul_dtype=jnp.float32))
    assert out_f32.shape == (B, O), out_f32.shape
    assert jnp.allclose(out_f32, ref, atol=2e-4, rtol=2e-4), "f32 mismatch vs reference"

    # bf16 fast path (default on v5e/v6e/v7x): looser tolerance vs the f32 reference.
    out_bf16 = jax.block_until_ready(
        sequence_model_pallas(x, params, matmul_dtype=jnp.bfloat16))
    assert out_bf16.shape == (B, O), out_bf16.shape
    assert bool(jnp.all(jnp.isfinite(out_bf16)))
    assert float(jnp.max(jnp.abs(out_bf16 - ref))) < 5e-2, "bf16 mismatch vs reference"

    print("KERNEL_OK")
</pallas_src>

<mosaic_0001>
module attributes {stable_mosaic.version = 11 : i64} {
  func.func @seq_model_kernel(%arg0: i32, %arg1: memref<16x32xf32, #tpu.memory_space<vmem>>, %arg2: memref<2x8xf32, #tpu.memory_space<vmem>>, %arg3: memref<32x384xf32, #tpu.memory_space<vmem>>, %arg4: memref<1x384xf32, #tpu.memory_space<vmem>>, %arg5: memref<128x128xf32, #tpu.memory_space<vmem>>, %arg6: memref<1x128xf32, #tpu.memory_space<vmem>>, %arg7: memref<128x128xf32, #tpu.memory_space<vmem>>, %arg8: memref<1x128xf32, #tpu.memory_space<vmem>>, %arg9: memref<128x128xf32, #tpu.memory_space<vmem>>, %arg10: memref<1x128xf32, #tpu.memory_space<vmem>>, %arg11: memref<2x128xf32, #tpu.memory_space<vmem>>) attributes {dimension_semantics = [#tpu.dimension_semantics<parallel>], iteration_bounds = array<i64: 1>, scalar_prefetch = 0 : i64, scratch_operands = 0 : i64, tpu.core_type = #tpu.core_type<tc>, window_params = [{transform_indices = @transform_0, window_bounds = array<i64: 16, 32>}, {transform_indices = @transform_1, window_bounds = array<i64: 2, 8>}, {pipeline_mode = #tpu.pipeline_mode<synchronous>, transform_indices = @transform_2, window_bounds = array<i64: 32, 384>}, {pipeline_mode = #tpu.pipeline_mode<synchronous>, transform_indices = @transform_3, window_bounds = array<i64: 1, 384>}, {pipeline_mode = #tpu.pipeline_mode<synchronous>, transform_indices = @transform_4, window_bounds = array<i64: 128, 128>}, {pipeline_mode = #tpu.pipeline_mode<synchronous>, transform_indices = @transform_5, window_bounds = array<i64: 1, 128>}, {pipeline_mode = #tpu.pipeline_mode<synchronous>, transform_indices = @transform_6, window_bounds = array<i64: 128, 128>}, {pipeline_mode = #tpu.pipeline_mode<synchronous>, transform_indices = @transform_7, window_bounds = array<i64: 1, 128>}, {pipeline_mode = #tpu.pipeline_mode<synchronous>, transform_indices = @transform_8, window_bounds = array<i64: 128, 128>}, {pipeline_mode = #tpu.pipeline_mode<synchronous>, transform_indices = @transform_9, window_bounds = array<i64: 1, 128>}, {transform_indices = @transform_10, window_bounds = array<i64: 2, 128>}]} {
    %c0 = arith.constant 0 : index
    %c0_0 = arith.constant 0 : index
    %0 = vector.load %arg1[%c0, %c0_0] : memref<16x32xf32, #tpu.memory_space<vmem>>, vector<16x32xf32>
    %c0_1 = arith.constant 0 : index
    %c0_2 = arith.constant 0 : index
    %1 = vector.load %arg3[%c0_1, %c0_2] : memref<32x384xf32, #tpu.memory_space<vmem>>, vector<32x384xf32>
    %cst = arith.constant dense<0.000000e+00> : vector<16x384xf32>
    %2 = tpu.matmul %0, %1, %cst {dimension_numbers = #tpu.dot_dimension_numbers<[1], [0], [0], [1], [0, 0, 1, 1], [], []>} : vector<16x32xf32>, vector<32x384xf32>, vector<16x384xf32> -> vector<16x384xf32>
    %c0_3 = arith.constant 0 : index
    %c0_4 = arith.constant 0 : index
    %3 = vector.load %arg4[%c0_3, %c0_4] : memref<1x384xf32, #tpu.memory_space<vmem>>, vector<1x384xf32>
    %4 = vector.broadcast %3 : vector<1x384xf32> to vector<16x384xf32>
    %5 = arith.addf %2, %4 : vector<16x384xf32>
    %6 = vector.shape_cast %5 : vector<16x384xf32> to vector<2x8x384xf32>
    %7 = vector.extract_strided_slice %6 {offsets = [0, 0, 0], sizes = [2, 8, 128], strides = [1, 1, 1]} : vector<2x8x384xf32> to vector<2x8x128xf32>
    %8 = vector.extract_strided_slice %6 {offsets = [0, 0, 128], sizes = [2, 8, 128], strides = [1, 1, 1]} : vector<2x8x384xf32> to vector<2x8x128xf32>
    %9 = vector.extract_strided_slice %6 {offsets = [0, 0, 256], sizes = [2, 8, 128], strides = [1, 1, 1]} : vector<2x8x384xf32> to vector<2x8x128xf32>
    "tpu.trace_start"() <{level = 10 : i32, message = "bqe,bke->bqk"}> : () -> ()
    %cst_5 = arith.constant dense<0.000000e+00> : vector<2x8x8xf32>
    %10 = tpu.matmul %7, %8, %cst_5 {dimension_numbers = #tpu.dot_dimension_numbers<[2], [2], [1], [1], [0, 0, 0, 1, 1, 1], [0], [0]>} : vector<2x8x128xf32>, vector<2x8x128xf32>, vector<2x8x8xf32> -> vector<2x8x8xf32>
    "tpu.trace_stop"() : () -> ()
    %cst_6 = arith.constant 0.176776692 : f32
    %11 = vector.broadcast %cst_6 : f32 to vector<2x8x8xf32>
    %12 = arith.mulf %10, %11 : vector<2x8x8xf32>
    %c0_7 = arith.constant 0 : index
    %c0_8 = arith.constant 0 : index
    %13 = vector.load %arg2[%c0_7, %c0_8] : memref<2x8xf32, #tpu.memory_space<vmem>>, vector<2x8xf32>
    %14 = vector.shape_cast %13 : vector<2x8xf32> to vector<2x1x8xf32>
    %15 = vector.broadcast %14 : vector<2x1x8xf32> to vector<2x8x8xf32>
    %16 = arith.addf %12, %15 : vector<2x8x8xf32>
    %cst_9 = arith.constant dense<0xFF800000> : vector<2x8xf32>
    %17 = vector.multi_reduction <maximumf>, %16, %cst_9 [2] : vector<2x8x8xf32> to vector<2x8xf32>
    %18 = vector.shape_cast %17 : vector<2x8xf32> to vector<2x8x1xf32>
    %19 = vector.broadcast %18 : vector<2x8x1xf32> to vector<2x8x8xf32>
    %20 = arith.subf %16, %19 : vector<2x8x8xf32>
    %21 = math.exp %20 : vector<2x8x8xf32>
    %cst_10 = arith.constant dense<0.000000e+00> : vector<2x8xf32>
    %22 = vector.multi_reduction <add>, %21, %cst_10 [2] : vector<2x8x8xf32> to vector<2x8xf32>
    %23 = vector.shape_cast %22 : vector<2x8xf32> to vector<2x8x1xf32>
    "tpu.trace_start"() <{level = 10 : i32, message = "bqk,bke->bqe"}> : () -> ()
    %cst_11 = arith.constant dense<0.000000e+00> : vector<2x8x128xf32>
    %24 = tpu.matmul %21, %9, %cst_11 {dimension_numbers = #tpu.dot_dimension_numbers<[2], [1], [1], [2], [0, 0, 0, 1, 1, 2], [0], [0]>} : vector<2x8x8xf32>, vector<2x8x128xf32>, vector<2x8x128xf32> -> vector<2x8x128xf32>
    "tpu.trace_stop"() : () -> ()
    %cst_12 = arith.constant 8.000000e+00 : f32
    %25 = vector.broadcast %cst_12 : f32 to vector<2x8x1xf32>
    %26 = arith.mulf %23, %25 : vector<2x8x1xf32>
    %27 = tpu.reciprocal %26 : vector<2x8x1xf32> -> vector<2x8x1xf32>
    %28 = vector.broadcast %27 : vector<2x8x1xf32> to vector<2x8x128xf32>
    %29 = arith.mulf %24, %28 : vector<2x8x128xf32>
    %cst_13 = arith.constant dense<0.000000e+00> : vector<2x128xf32>
    %30 = vector.multi_reduction <add>, %29, %cst_13 [1] : vector<2x8x128xf32> to vector<2x128xf32>
    %c0_14 = arith.constant 0 : index
    %c0_15 = arith.constant 0 : index
    %31 = vector.load %arg5[%c0_14, %c0_15] : memref<128x128xf32, #tpu.memory_space<vmem>>, vector<128x128xf32>
    %cst_16 = arith.constant dense<0.000000e+00> : vector<2x128xf32>
    %32 = tpu.matmul %30, %31, %cst_16 {dimension_numbers = #tpu.dot_dimension_numbers<[1], [0], [0], [1], [0, 0, 1, 1], [], []>} : vector<2x128xf32>, vector<128x128xf32>, vector<2x128xf32> -> vector<2x128xf32>
    %c0_17 = arith.constant 0 : index
    %c0_18 = arith.constant 0 : index
    %33 = vector.load %arg6[%c0_17, %c0_18] : memref<1x128xf32, #tpu.memory_space<vmem>>, vector<1x128xf32>
    %34 = vector.broadcast %33 : vector<1x128xf32> to vector<2x128xf32>
    %35 = arith.addf %32, %34 : vector<2x128xf32>
    %c0_19 = arith.constant 0 : index
    %c0_20 = arith.constant 0 : index
    %36 = vector.load %arg7[%c0_19, %c0_20] : memref<128x128xf32, #tpu.memory_space<vmem>>, vector<128x128xf32>
    %cst_21 = arith.constant dense<0.000000e+00> : vector<2x128xf32>
    %37 = tpu.matmul %35, %36, %cst_21 {dimension_numbers = #tpu.dot_dimension_numbers<[1], [0], [0], [1], [0, 0, 1, 1], [], []>} : vector<2x128xf32>, vector<128x128xf32>, vector<2x128xf32> -> vector<2x128xf32>
    %c0_22 = arith.constant 0 : index
    %c0_23 = arith.constant 0 : index
    %38 = vector.load %arg8[%c0_22, %c0_23] : memref<1x128xf32, #tpu.memory_space<vmem>>, vector<1x128xf32>
    %39 = vector.broadcast %38 : vector<1x128xf32> to vector<2x128xf32>
    %40 = arith.addf %37, %39 : vector<2x128xf32>
    %cst_24 = arith.constant 0.000000e+00 : f32
    %41 = vector.broadcast %cst_24 : f32 to vector<2x128xf32>
    %42 = arith.maximumf %40, %41 : vector<2x128xf32>
    %c0_25 = arith.constant 0 : index
    %c0_26 = arith.constant 0 : index
    %43 = vector.load %arg9[%c0_25, %c0_26] : memref<128x128xf32, #tpu.memory_space<vmem>>, vector<128x128xf32>
    %cst_27 = arith.constant dense<0.000000e+00> : vector<2x128xf32>
    %44 = tpu.matmul %42, %43, %cst_27 {dimension_numbers = #tpu.dot_dimension_numbers<[1], [0], [0], [1], [0, 0, 1, 1], [], []>} : vector<2x128xf32>, vector<128x128xf32>, vector<2x128xf32> -> vector<2x128xf32>
    %c0_28 = arith.constant 0 : index
    %c0_29 = arith.constant 0 : index
    %45 = vector.load %arg10[%c0_28, %c0_29] : memref<1x128xf32, #tpu.memory_space<vmem>>, vector<1x128xf32>
    %46 = vector.broadcast %45 : vector<1x128xf32> to vector<2x128xf32>
    %47 = arith.addf %44, %46 : vector<2x128xf32>
    %c0_30 = arith.constant 0 : index
    %c0_31 = arith.constant 0 : index
    %48 = vector.load %arg11[%c0_30, %c0_31] : memref<2x128xf32, #tpu.memory_space<vmem>>, vector<2x128xf32>
    tpu.vector_store %arg11[%c0_30, %c0_31], %47 {strides = array<i32>} : memref<2x128xf32, #tpu.memory_space<vmem>>, vector<2x128xf32>,
    return
  }
  func.func @transform_0(%arg0: i32) -> (i32, i32) {
    %c0_i32 = arith.constant 0 : i32
    %c0_i32_0 = arith.constant 0 : i32
    return %arg0, %c0_i32 : i32, i32
  }
  func.func @transform_1(%arg0: i32) -> (i32, i32) {
    %c0_i32 = arith.constant 0 : i32
    %c0_i32_0 = arith.constant 0 : i32
    return %arg0, %c0_i32 : i32, i32
  }
  func.func @transform_2(%arg0: i32) -> (i32, i32) {
    %c0_i32 = arith.constant 0 : i32
    %c0_i32_0 = arith.constant 0 : i32
    %c0_i32_1 = arith.constant 0 : i32
    return %c0_i32, %c0_i32_0 : i32, i32
  }
  func.func @transform_3(%arg0: i32) -> (i32, i32) {
    %c0_i32 = arith.constant 0 : i32
    %c0_i32_0 = arith.constant 0 : i32
    %c0_i32_1 = arith.constant 0 : i32
    return %c0_i32, %c0_i32_0 : i32, i32
  }
  func.func @transform_4(%arg0: i32) -> (i32, i32) {
    %c0_i32 = arith.constant 0 : i32
    %c0_i32_0 = arith.constant 0 : i32
    %c0_i32_1 = arith.constant 0 : i32
    return %c0_i32, %c0_i32_0 : i32, i32
  }
  func.func @transform_5(%arg0: i32) -> (i32, i32) {
    %c0_i32 = arith.constant 0 : i32
    %c0_i32_0 = arith.constant 0 : i32
    %c0_i32_1 = arith.constant 0 : i32
    return %c0_i32, %c0_i32_0 : i32, i32
  }
  func.func @transform_6(%arg0: i32) -> (i32, i32) {
    %c0_i32 = arith.constant 0 : i32
    %c0_i32_0 = arith.constant 0 : i32
    %c0_i32_1 = arith.constant 0 : i32
    return %c0_i32, %c0_i32_0 : i32, i32
  }
  func.func @transform_7(%arg0: i32) -> (i32, i32) {
    %c0_i32 = arith.constant 0 : i32
    %c0_i32_0 = arith.constant 0 : i32
    %c0_i32_1 = arith.constant 0 : i32
    return %c0_i32, %c0_i32_0 : i32, i32
  }
  func.func @transform_8(%arg0: i32) -> (i32, i32) {
    %c0_i32 = arith.constant 0 : i32
    %c0_i32_0 = arith.constant 0 : i32
    %c0_i32_1 = arith.constant 0 : i32
    return %c0_i32, %c0_i32_0 : i32, i32
  }
  func.func @transform_9(%arg0: i32) -> (i32, i32) {
    %c0_i32 = arith.constant 0 : i32
    %c0_i32_0 = arith.constant 0 : i32
    %c0_i32_1 = arith.constant 0 : i32
    return %c0_i32, %c0_i32_0 : i32, i32
  }
  func.func @transform_10(%arg0: i32) -> (i32, i32) {
    %c0_i32 = arith.constant 0 : i32
    %c0_i32_0 = arith.constant 0 : i32
    return %arg0, %c0_i32 : i32, i32
  }
}

</mosaic_0001>

<bundles_post_ra>
// kernel: tpu_custom_call.1
= control target key start
LH: loop header
LB: loop body
LE: loop exit
PB: predicated region body
PF: predicated region fallthrough
CT: control target
= control target key end

     0   :  { %15 = vsyncpa [#allocation3], 0  ;;  %s1546_s0 = inlined_call_operand.hbm [shape: f32[16,32], index: 0, kind: input, shape index: {}]   ;;  %s1547_s1 = inlined_call_operand.hbm [shape: f32[2,8], index: 1, kind: input, shape index: {}]   ;;  %s1548_s2 = inlined_call_operand.hbm [shape: f32[32,384], index: 2, kind: input, shape index: {}]   ;;  %s1549_s3 = inlined_call_operand.vmem [shape: f32[1,384], index: 3, kind: input, shape index: {}]   ;;  %s1550_s4 = inlined_call_operand.hbm [shape: f32[128,128], index: 4, kind: input, shape index: {}]   ;;  %s1551_s5 = inlined_call_operand.vmem [shape: f32[1,128], index: 5, kind: input, shape index: {}]   ;;  %s1552_s6 = inlined_call_operand.hbm [shape: f32[128,128], index: 6, kind: input, shape index: {}]   ;;  %s1553_s7 = inlined_call_operand.vmem [shape: f32[1,128], index: 7, kind: input, shape index: {}]   ;;  %s1554_s8 = inlined_call_operand.hbm [shape: f32[128,128], index: 8, kind: input, shape index: {}]   ;;  %s1555_s9 = inlined_call_operand.vmem [shape: f32[1,128], index: 9, kind: input, shape index: {}]   ;;  %s1556_s10 = inlined_call_operand.hbm [shape: f32[2,128], index: 10, kind: output, shape index: {}]  }
   0x1   :  { %16 = vsyncpa [#allocation6], 0 }
   0x2   :  { %17 = vsyncpa [#allocation9], 0 }
   0x3   :  { %18 = vsyncpa [#allocation12], 0 }
   0x4   :  { %19 = vsyncpa [#allocation4], 0  ;;  %s1354_s13 = smov [#allocation5]  }
   0x5   :  { %s38_s14 = sshll.u32 %s1354_s13, 4  ;;  %s39_s14 = int_to_ptr.vmem [resolvable:$true] %s38_s14 }
   0x6   :  { %s1212_s15 = scalar_lea.vmem %s39_s14, 32  ;;  %p1217_p1 = scmp.lt.s32.totalorder %s39_s14, %s39_s14 }
   0x7   :  { %p1213_p0 = scmp.ne.s32.totalorder %s39_s14, %s1212_s15  ;;  %p1218_p2 = scmp.lt.s32.totalorder %s1212_s15, %s1212_s15 }
   0x9   :  { %p1219_p3 = por %p1218_p2, %p1217_p1 }
   0xb   :  { %p1220_p4 = pnand %p1219_p3, %p1213_p0 }
   0xd   :  { %1223 = shalt.err (!%p1220_p4)
}
   0xe   :  { %41 = dma.hbm_to_vmem [thread:$0]  %s1547_s1, 32, %s39_s14, [#allocation6]  }
   0xf   :  { %s1355_s18 = smov [#allocation8]   ;;  %s1356_s20 = smov [#allocation2]  }
  0x10   :  { %s61_s19 = sshll.u32 %s1355_s18, 4  ;;  %s25_s21 = sshll.u32 %s1356_s20, 4  ;;  %s62_s19 = int_to_ptr.vmem [resolvable:$true] %s61_s19  ;;  %s26_s21 = int_to_ptr.vmem [resolvable:$true] %s25_s21 }
  0x11   :  { %s1232_s22 = scalar_lea.vmem %s62_s19, 2048  ;;  %p1237_p6 = scmp.lt.s32.totalorder %s62_s19, %s62_s19 }
  0x12   :  { %p1233_p5 = scmp.ne.s32.totalorder %s62_s19, %s1232_s22  ;;  %p1238_p7 = scmp.lt.s32.totalorder %s1232_s22, %s1232_s22 }
  0x14   :  { %p1239_p8 = por %p1238_p7, %p1237_p6 }
  0x16   :  { %p1240_p9 = pnand %p1239_p8, %p1233_p5 }
  0x18   :  { %1243 = shalt.err (!%p1240_p9)
}
  0x19   :  { %s1357_s23 = smov 128   ;;  %s1358_s24 = smov 8  }
  0x1a   :  { %67 = dma.hbm_to_vmem [thread:$0]  %s1550_s4, 2048, %s62_s19, [#allocation9], %s1357_s23, %s1357_s23, %s1358_s24  }
  0x1b   :  { %s1252_s1 = scalar_lea.vmem %s26_s21, 256  ;;  %p1257_p11 = scmp.lt.s32.totalorder %s26_s21, %s26_s21 }
  0x1c   :  { %p1253_p10 = scmp.ne.s32.totalorder %s26_s21, %s1252_s1  ;;  %p1258_p12 = scmp.lt.s32.totalorder %s1252_s1, %s1252_s1 }
  0x1e   :  { %p1259_p13 = por %p1258_p12, %p1257_p11 }
  0x20   :  { %p1260_p0 = pnand %p1259_p13, %p1253_p10 }
  0x22   :  { %1263 = shalt.err (!%p1260_p0)
}
  0x23   :  { %31 = dma.hbm_to_vmem [thread:$0]  %s1546_s0, 256, %s26_s21, [#allocation3], %s1357_s23, %s1357_s23, %s1358_s24  }
  0x24   :  { %s1359_s29 = smov [#allocation7]  }
  0x25   :  { %s47_s30 = sshll.u32 %s1359_s29, 4  ;;  %s48_s30 = int_to_ptr.vmem [resolvable:$true] %s47_s30 }
  0x26   :  { %s1272_s11 = scalar_lea.vmem %s48_s30, 1536  ;;  %p1277_p2 = scmp.lt.s32.totalorder %s48_s30, %s48_s30 }
  0x27   :  { %p1273_p1 = scmp.ne.s32.totalorder %s48_s30, %s1272_s11  ;;  %p1278_p3 = scmp.lt.s32.totalorder %s1272_s11, %s1272_s11 }
  0x29   :  { %p1279_p4 = por %p1278_p3, %p1277_p2 }
  0x2b   :  { %p1280_p5 = pnand %p1279_p4, %p1273_p1 }
  0x2d   :  { %1283 = shalt.err (!%p1280_p5)
}
  0x2e   :  { %s1360_s4 = smov 384   ;;  %s1361_s12 = smov 24  }
  0x2f   :  { %53 = dma.hbm_to_vmem [thread:$0]  %s1548_s2, 1536, %s48_s30, [#allocation6], %s1360_s4, %s1360_s4, %s1361_s12  }
  0x30   :  { %s1362_s15 = smov [#allocation10]   ;;  %s1363_s17 = smov [#allocation11]  }
  0x31   :  { %s75_s16 = sshll.u32 %s1362_s15, 4  ;;  %s89_s0 = sshll.u32 %s1363_s17, 4  ;;  %s76_s16 = int_to_ptr.vmem [resolvable:$true] %s75_s16  ;;  %s90_s0 = int_to_ptr.vmem [resolvable:$true] %s89_s0 }
  0x32   :  { %s1292_s18 = scalar_lea.vmem %s76_s16, 2048  ;;  %p1297_p7 = scmp.lt.s32.totalorder %s76_s16, %s76_s16 }
  0x33   :  { %p1293_p6 = scmp.ne.s32.totalorder %s76_s16, %s1292_s18  ;;  %p1298_p8 = scmp.lt.s32.totalorder %s1292_s18, %s1292_s18 }
  0x35   :  { %p1299_p9 = por %p1298_p8, %p1297_p7 }
  0x37   :  { %p1300_p10 = pnand %p1299_p9, %p1293_p6 }
  0x39   :  { %1303 = shalt.err (!%p1300_p10)
}
  0x3a   :  { %81 = dma.hbm_to_vmem [thread:$0]  %s1552_s6, 2048, %s76_s16, [#allocation9], %s1357_s23, %s1357_s23, %s1358_s24  }
  0x3b   :  { %s1312_s2 = scalar_lea.vmem %s90_s0, 2048  ;;  %p1317_p12 = scmp.lt.s32.totalorder %s90_s0, %s90_s0 }
  0x3c   :  { %p1313_p11 = scmp.ne.s32.totalorder %s90_s0, %s1312_s2  ;;  %p1318_p13 = scmp.lt.s32.totalorder %s1312_s2, %s1312_s2 }
  0x3e   :  { %p1319_p0 = por %p1318_p13, %p1317_p12 }
  0x40   :  { %p1320_p1 = pnand %p1319_p0, %p1313_p11 }
  0x42   :  { %1323 = shalt.err (!%p1320_p1)
}
  0x43   :  { %95 = dma.hbm_to_vmem [thread:$0]  %s1554_s8, 2048, %s90_s0, [#allocation12], %s1357_s23, %s1357_s23, %s1358_s24  }
  0x44   :  { %1344 = dma.done.wait [#allocation3], 256  }
  0x45   :  { %1345 = vsyncadd [#allocation3], 4294967040 }
  0x46   :  { %1346 = dma.done.wait [#allocation6], 1568  }
  0x47   :  { %1347 = vsyncadd [#allocation6], 4294965728 }
  0x48   :  { %1348 = dma.done.wait [#allocation9], 4096  }
  0x49   :  { %1349 = vsyncadd [#allocation9], 4294963200 }
  0x4a   :  { %1350 = dma.done.wait [#allocation12], 2048  }
  0x4b   :  { %1351 = vsyncadd [#allocation12], 4294965248  ;;  %v1364_v0 = vmov 0.0   ;;  %v128_v1 = vld [vmem:[#allocation7 + $0x50] sm:$0xff]  ;;  %v127_v2 = vld [vmem:[#allocation7 + $0x48] sm:$0xff]  ;;  %vm147_vm0 = vcmask 261120   ;;  %v132_v15 = vlaneseq }
  0x4c   :  { %218 = vmatprep.mubr.f32.mxu0 %v1364_v0  ;;  %1077 = vmatprep.subr.mxu1 %v1364_v0  ;;  %v125_v3 = vld [vmem:[#allocation7 + $0x38] sm:$0xff]  ;;  %v124_v4 = vld [vmem:[#allocation7 + $0x30] sm:$0xff]  ;;  %v122_v5 = vld [vmem:[#allocation7 + $0x20] sm:$0xff]  ;;  %vm1365_vm1 = vmmov 0   ;;  %v1366_v36 = vmov 1966171168  }
  0x4d   :  { %178 = vmatprep.subr.mxu0 %v128_v1  ;;  %v121_v6 = vld [vmem:[#allocation7 + $0x18] sm:$0xff]  ;;  %v119_v7 = vld [vmem:[#allocation7 + $0x8] sm:$0xff]  ;;  %v118_v8 = vld [vmem:[#allocation7] sm:$0xff]  ;;  %1109 = vmatprep.mubr.msk.f32.mxu1 %vm1365_vm1, %v1364_v0  ;;  %v133_v16 = vshrl.u32 %v132_v15, 7  ;;  %v459_v37 = vunpack.c.l.s4 %v1366_v36  ;;  %vm484_vm2 = vcmask 64512   ;;  %vm692_vm3 = vcmask 1041409  }
  0x4e   :  { %179 = vmatpush1.msra.mxu0 %v127_v2  ;;  %v116_v9 = vld [vmem:[#allocation2] sm:$0xff]  ;;  %v129_v10 = vld [vmem:[#allocation7 + $0x58] sm:$0xff]  ;;  %v126_v11 = vld [vmem:[#allocation7 + $0x40] sm:$0xff]  ;;  %s1367_s1 = smov [#allocation13]  }
  0x4f   :  { %180 = vmatprep.subr.mxu0 %v125_v3  ;;  %v117_v12 = vld [vmem:[#allocation2 + $0x8] sm:$0xff]  ;;  %v123_v13 = vld [vmem:[#allocation7 + $0x28] sm:$0xff]  ;;  %v138_v17 = vsub.s32 1, %v133_v16  ;;  %v134_v19 = vsub.s32 0, %v133_v16  ;;  %v142_v30 = vsub.s32 2, %v133_v16  ;;  %v460_v38 = vunpack.c.0.s8 %v459_v37  ;;  %s959_s27 = sshll.u32 %s1367_s1, 4  ;;  %s960_s27 = int_to_ptr.vmem [resolvable:$true] %s959_s27 }
  0x50   :  { %181 = vmatpush1.msra.mxu0 %v124_v4  ;;  %v120_v14 = vld [vmem:[#allocation7 + $0x10] sm:$0xff]  ;;  %v975_v40 = vld.sshfl [vmem:[#allocation5] sm:$0x11 pattern:$0x75316420]  ;;  %s1324_s28 = scalar_lea.vmem %s960_s27, 32  ;;  %p1329_p3 = scmp.lt.s32.totalorder %s960_s27, %s960_s27 }
  0x51   :  { %182 = vmatprep.subr.mxu0 %v122_v5  ;;  %v130_v18 = vld [vmem:[%s1549_s3] sm:$0x7]  ;;  %v463_v39 = vsub.s32 %v460_v38, %v133_v16  ;;  %v457_v41 = vcombine.high %v975_v40, %v975_v40  ;;  %v682_v3 = vld [vmem:[#allocation8 + $0x78] sm:$0xff]  ;;  %p1325_p2 = scmp.ne.s32.totalorder %s960_s27, %s1324_s28  ;;  %p1330_p4 = scmp.lt.s32.totalorder %s1324_s28, %s1324_s28 }
  0x52   :  { %183 = vmatpush1.msra.mxu0 %v121_v6  ;;  %v139_v20 = vrot.slane %v130_v18, %v138_v17  ;;  %v135_v22 = vrot.slane %v130_v18, %v134_v19  ;;  %v143_v31 = vrot.slane %v130_v18, %v142_v30  ;;  %v681_v4 = vld [vmem:[#allocation8 + $0x70] sm:$0xff]  ;;  %1078 = vmatpush3.msra.mxu1 %v682_v3  ;;  %v680_v5 = vld [vmem:[#allocation8 + $0x68] sm:$0xff]  ;;  %v679_v6 = vld [vmem:[#allocation8 + $0x60] sm:$0xff] }
  0x53   :  { %184 = vmatprep.subr.mxu0 %v119_v7  ;;  %v464_v42 = vrot.slane %v975_v40, %v463_v39  ;;  %v471_v44 = vrot.slane %v457_v41, %v463_v39  ;;  %1079 = vmatprep.subr.mxu1 %v1364_v0  ;;  %v678_v7 = vld [vmem:[#allocation8 + $0x58] sm:$0xff]  ;;  %v669_v16 = vld [vmem:[#allocation8 + $0x10] sm:$0xff]  ;;  %v668_v17 = vld [vmem:[#allocation8 + $0x8] sm:$0xff]  ;;  %p1331_p5 = por %p1330_p4, %p1329_p3 }
  0x54   :  { %185 = vmatpush1.msra.mxu0 %v118_v8  ;;  %1080 = vmatpush3.msra.mxu1 %v681_v4  ;;  %v677_v8 = vld [vmem:[#allocation8 + $0x50] sm:$0xff]  ;;  %v670_v15 = vld [vmem:[#allocation8 + $0x18] sm:$0xff]  ;;  %v667_v18 = vld [vmem:[#allocation8] sm:$0xff] }
  0x55   :  { %971 = vmatmul.mubr.msk.f32.vlgmr.msra.gmra.mxu0 %vm147_vm0, %v116_v9  ;;  %1046 = vmatprep.subr.mxu0 %v129_v10  ;;  %v475_v43 = vrot.slane %v464_v42, %v134_v19  ;;  %v479_v49 = vrot.slane %v471_v44, %v134_v19  ;;  %v780_v19 = vld [vmem:[#allocation10 + $0x78] sm:$0xff]  ;;  %v769_v30 = vld [vmem:[#allocation10 + $0x20] sm:$0xff]  ;;  %v868_v3 = vld [vmem:[#allocation11 + $0x48] sm:$0xff]  ;;  %p1332_p6 = pnand %p1331_p5, %p1325_p2 }
  0x56   :  { %224 = vmatprep.mubr.f32.mxu0 %v1364_v0  ;;  %1047 = vmatpush3.msra.mxu0 %v129_v10  ;;  %v675_v10 = vld [vmem:[#allocation8 + $0x40] sm:$0xff] }
  0x57   :  { %1048 = vmatprep.subr.mxu0 %v126_v11  ;;  %1081 = vmatprep.subr.mxu1 %v1364_v0  ;;  %v867_v4 = vld [vmem:[#allocation11 + $0x40] sm:$0xff] }
  0x58   :  { %1049 = vmatpush3.msra.mxu0 %v126_v11  ;;  %1082 = vmatpush3.msra.mxu1 %v680_v5  ;;  %v674_v11 = vld [vmem:[#allocation8 + $0x38] sm:$0xff] }
  0x59   :  { %972 = vmatmul.mubr.msk.f32.gmra.mxu0 %vm147_vm0, %v117_v12  ;;  %1050 = vmatprep.subr.mxu0 %v123_v13  ;;  %v866_v5 = vld [vmem:[#allocation11 + $0x38] sm:$0xff] }
  0x5a   :  { %1051 = vmatpush3.msra.mxu0 %v123_v13  ;;  %1054 = vmatprep.mubr.msk.f32.mxu0 %vm147_vm0, %v116_v9  ;;  %v676_v9 = vld [vmem:[#allocation8 + $0x48] sm:$0xff] }
  0x5b   :  { %1052 = vmatprep.subr.mxu0 %v120_v14  ;;  %1083 = vmatprep.subr.mxu1 %v1364_v0  ;;  %v672_v13 = vld [vmem:[#allocation8 + $0x28] sm:$0xff] }
  0x5c   :  { %1053 = vmatpush3.msra.mxu0 %v120_v14  ;;  %1084 = vmatpush3.msra.mxu1 %v679_v6  ;;  %v671_v14 = vld [vmem:[#allocation8 + $0x20] sm:$0xff]  ;;  %v865_v6 = vld [vmem:[#allocation11 + $0x30] sm:$0xff] }
  0x5d   :  { %1055 = vmatmul.mubr.msk.f32.vlgmr.msra.gmra.mxu0 %vm147_vm0, %v117_v12  ;;  %1057 = vmatprep.subr.mxu0 %v1364_v0  ;;  %v673_v12 = vld [vmem:[#allocation8 + $0x30] sm:$0xff] }
  0x5e   :  { %1059 = vmatprep.mubr.msk.f32.mxu0 %vm1365_vm1, %v1364_v0  ;;  %1085 = vmatprep.subr.mxu1 %v1364_v0 }
  0x5f   :  { %1086 = vmatpush3.msra.mxu1 %v678_v7  ;;  %v864_v7 = vld [vmem:[#allocation11 + $0x28] sm:$0xff] }
  0x60   :  { %1087 = vmatprep.subr.mxu1 %v1364_v0 }
  0x61   :  { %1088 = vmatpush3.msra.mxu1 %v677_v8  ;;  %v863_v8 = vld [vmem:[#allocation11 + $0x20] sm:$0xff] }
  0x62   :  { %1089 = vmatprep.subr.mxu1 %v1364_v0 }
  0x63   :  { %1090 = vmatpush3.msra.mxu1 %v676_v9  ;;  %v862_v9 = vld [vmem:[#allocation11 + $0x18] sm:$0xff] }
  0x64   :  { %1091 = vmatprep.subr.mxu1 %v1364_v0 }
  0x65   :  { %1092 = vmatpush3.msra.mxu1 %v675_v10  ;;  %v978_v10 = vld [vmem:[%s1551_s5] ss:$0 sm:$0xff] }
  0x66   :  { %1093 = vmatprep.subr.mxu1 %v1364_v0 }
  0x67   :  { %1094 = vmatpush3.msra.mxu1 %v674_v11 }
  0x68   :  { %1095 = vmatprep.subr.mxu1 %v1364_v0 }
  0x69   :  { %1096 = vmatpush3.msra.mxu1 %v673_v12 }
  0x6a   :  { %1097 = vmatprep.subr.mxu1 %v1364_v0 }
  0x6b   :  { %1098 = vmatpush3.msra.mxu1 %v672_v13 }
  0x6c   :  { %1099 = vmatprep.subr.mxu1 %v1364_v0 }
  0x6d   :  { %1100 = vmatpush3.msra.mxu1 %v671_v14  ;;  %v861_v14 = vld [vmem:[#allocation11 + $0x10] sm:$0xff] }
  0x6e   :  { %1101 = vmatprep.subr.mxu1 %v1364_v0 }
  0x6f   :  { %1102 = vmatpush3.msra.mxu1 %v670_v15  ;;  %v860_v15 = vld [vmem:[#allocation11 + $0x8] sm:$0xff] }
  0x70   :  { %1103 = vmatprep.subr.mxu1 %v1364_v0 }
  0x71   :  { %1104 = vmatpush3.msra.mxu1 %v669_v16  ;;  %v859_v16 = vld [vmem:[#allocation11] sm:$0xff] }
  0x72   :  { %1105 = vmatprep.subr.mxu1 %v1364_v0 }
  0x73   :  { %1106 = vmatpush3.msra.mxu1 %v668_v17  ;;  %v979_v17 = vld [vmem:[%s1553_s7] ss:$0 sm:$0xff] }
  0x74   :  { %1107 = vmatprep.subr.mxu1 %v1364_v0 }
  0x75   :  { %1108 = vmatpush3.msra.mxu1 %v667_v18 }
  0x76   :  { %1147 = vmatprep.subr.mxu1 %v1364_v0 }
 0x115   :  { %v220_v21 = vpop.f32.mrf.mxu0 }
 0x116   :  { %v221_v26 = vadd.f32 %v220_v21, %v135_v22  ;;  %v778_v21 = vld [vmem:[#allocation10 + $0x68] sm:$0xff] }
 0x117   :  { %v222_v23 = vpop.f32.mrf.mxu0 }
 0x118   :  { %v223_v24 = vadd.f32 %v222_v23, %v139_v20  ;;  %v776_v23 = vld [vmem:[#allocation10 + $0x58] sm:$0xff] }
 0x119   :  { %v226_v25 = vpop.f32.mrf.mxu0 }
 0x11a   :  { %1058 = vmatpush3.xpose.msra.mxu0 %v223_v24  ;;  %v227_v29 = vadd.f32 %v226_v25, %v135_v22  ;;  %v777_v22 = vld [vmem:[#allocation10 + $0x60] sm:$0xff]  ;;  %v775_v24 = vld [vmem:[#allocation10 + $0x50] sm:$0xff]  ;;  %v774_v25 = vld [vmem:[#allocation10 + $0x48] sm:$0xff] }
 0x11b   :  { %v228_v27 = vpop.f32.mrf.mxu0  ;;  %1062 = vmatprep.subr.mxu0 %v1364_v0 }
 0x11c   :  { %v229_v28 = vadd.f32 %v228_v27, %v139_v20  ;;  %v779_v20 = vld [vmem:[#allocation10 + $0x70] sm:$0xff]  ;;  %v772_v27 = vld [vmem:[#allocation10 + $0x38] sm:$0xff] }
 0x11d   :  { %1060 = vmatmul.mubr.f32.vlgmr.msra.gmra.mxu0 %v221_v26  ;;  %v1056_v32 = vpop.f32.mrf.mxu0  ;;  %v773_v26 = vld [vmem:[#allocation10 + $0x40] sm:$0xff] }
 0x11e   :  { %1063 = vmatpush3.xpose.msra.mxu0 %v229_v28  ;;  %1064 = vmatprep.mubr.msk.f32.mxu0 %vm1365_vm1, %v1364_v0  ;;  %v303_v33 = vadd.f32 %v1056_v32, %v143_v31  ;;  %v771_v28 = vld [vmem:[#allocation10 + $0x30] sm:$0xff] }
 0x11f   :  { %1067 = vmatprep.subr.mxu0 %v1364_v0  ;;  %v297_v34 = vpop.f32.mrf.mxu0  ;;  %v767_v32 = vld [vmem:[#allocation10 + $0x10] sm:$0xff] }
 0x120   :  { %v298_v35 = vadd.f32 %v297_v34, %v143_v31  ;;  %v768_v31 = vld [vmem:[#allocation10 + $0x18] sm:$0xff] }
 0x121   :  { %1065 = vmatmul.mubr.f32.vlgmr.msra.gmra.mxu0 %v227_v29  ;;  %v770_v29 = vld [vmem:[#allocation10 + $0x28] sm:$0xff] }
 0x122   :  { %1069 = vmatprep.mubr.msk.f32.mxu0 %vm1365_vm1, %v1364_v0  ;;  %1068 = vmatpush3.msra.mxu0 %v298_v35 }
 0x123   :  { %1072 = vmatprep.subr.mxu0 %v1364_v0 }
 0x1dd   :  { %v372_v45 = vpop.f32.mrf.mxu0 }
 0x1de   :  { %v446_v46 = vmul.f32 0.17677669, %v372_v45 }
 0x1df   :  { %v1061_v47 = vpop.f32.mrf.mxu0 }
 0x1e0   :  { %v482_v48 = vadd.f32 %v475_v43, %v446_v46 }
 0x1e1   :  { %v442_v50 = vpop.f32.mrf.mxu0 }
 0x1e2   :  { %v447_v51 = vmul.f32 0.17677669, %v442_v50  ;;  %v485_v52 = vsel %vm484_vm2, %v482_v48, -inf }
 0x1e3   :  { %486 = vmax.xlane.f32.xlu0 %v485_v52  ;;  %v1066_v53 = vpop.f32.mrf.mxu0 }
 0x1e4   :  { %v483_v54 = vadd.f32 %v479_v49, %v447_v51 }
 0x1e6   :  { %v488_v55 = vsel %vm484_vm2, %v483_v54, -inf }
 0x1e7   :  { %489 = vmax.xlane.f32.xlu0 %v488_v55 }
 0x26c   :  { %v487_v56 = vpop.xlane.xlu0 %486 }
 0x26d   :  { %v491_v57 = vsub.f32 %v482_v48, %v487_v56 }
 0x26f   :  { %v493_v58 = vmul.f32 1.442695, %v491_v57 }
 0x270   :  { %v490_v59 = vpop.xlane.xlu0 %489 }
 0x271   :  { %1196 = vpow2.f32 %v493_v58  ;;  %v492_v60 = vsub.f32 %v483_v54, %v490_v59  ;;  %v766_v58 = vld [vmem:[#allocation10 + $0x8] sm:$0xff]  ;;  %v765_v59 = vld [vmem:[#allocation10] sm:$0xff] }
 0x273   :  { %v495_v61 = vmul.f32 1.442695, %v492_v60  ;;  %v874_v60 = vld [vmem:[#allocation11 + $0x78] sm:$0xff] }
 0x275   :  { %1198 = vpow2.f32 %v495_v61  ;;  %v873_v61 = vld [vmem:[#allocation11 + $0x70] sm:$0xff] }
 0x27e   :  { %v1197_v62 = vpop.eup %1196 }
 0x27f   :  { %1070 = vmatmul.mubr.msk.f32.vlgmr.msra.gmra.mxu0 %vm484_vm2, %v1197_v62  ;;  %v497_v63 = vsel %vm484_vm2, %v1197_v62, 0.0  ;;  %v872_v62 = vld [vmem:[#allocation11 + $0x68] sm:$0xff] }
 0x280   :  { %1073 = vmatpush3.msra.mxu0 %v303_v33  ;;  %498 = vadd.xlane.f32.xlu1 %v497_v63  ;;  %v871_v63 = vld [vmem:[#allocation11 + $0x60] sm:$0xff] }
 0x281   :  { %1074 = vmatprep.mubr.msk.f32.mxu0 %vm1365_vm1, %v1364_v0  ;;  %1112 = vmatprep.subr.mxu0 %v1364_v0 }
 0x282   :  { %v1199_v1 = vpop.eup %1198 }
 0x283   :  { %1075 = vmatmul.mubr.msk.f32.vlgmr.msra.gmra.mxu0 %vm484_vm2, %v1199_v1  ;;  %v500_v2 = vsel %vm484_vm2, %v1199_v1, 0.0  ;;  %v870_v1 = vld [vmem:[#allocation11 + $0x58] sm:$0xff] }
 0x284   :  { %501 = vadd.xlane.f32.xlu1 %v500_v2  ;;  %1144 = vmatprep.mubr.msk.f32.mxu0 %vm1365_vm1, %v1364_v0  ;;  %v869_v2 = vld [vmem:[#allocation11 + $0x50] sm:$0xff] }
 0x285   :  { %1113 = vmatpush3.msra.mxu0 %v780_v19 }
 0x286   :  { %1114 = vmatprep.subr.mxu0 %v1364_v0 }
 0x287   :  { %1115 = vmatpush3.msra.mxu0 %v779_v20 }
 0x288   :  { %1116 = vmatprep.subr.mxu0 %v1364_v0 }
 0x289   :  { %1117 = vmatpush3.msra.mxu0 %v778_v21 }
 0x28a   :  { %1118 = vmatprep.subr.mxu0 %v1364_v0 }
 0x28b   :  { %1119 = vmatpush3.msra.mxu0 %v777_v22  ;;  %v980_v22 = vld [vmem:[%s1555_s9] ss:$0 sm:$0xff] }
 0x28c   :  { %1120 = vmatprep.subr.mxu0 %v1364_v0 }
 0x28d   :  { %1121 = vmatpush3.msra.mxu0 %v776_v23 }
 0x28e   :  { %1122 = vmatprep.subr.mxu0 %v1364_v0 }
 0x28f   :  { %1123 = vmatpush3.msra.mxu0 %v775_v24 }
 0x290   :  { %1124 = vmatprep.subr.mxu0 %v1364_v0 }
 0x291   :  { %1125 = vmatpush3.msra.mxu0 %v774_v25 }
 0x292   :  { %1126 = vmatprep.subr.mxu0 %v1364_v0 }
 0x293   :  { %1127 = vmatpush3.msra.mxu0 %v773_v26 }
 0x294   :  { %1128 = vmatprep.subr.mxu0 %v1364_v0 }
 0x295   :  { %1129 = vmatpush3.msra.mxu0 %v772_v27 }
 0x296   :  { %1130 = vmatprep.subr.mxu0 %v1364_v0 }
 0x297   :  { %1131 = vmatpush3.msra.mxu0 %v771_v28 }
 0x298   :  { %1132 = vmatprep.subr.mxu0 %v1364_v0 }
 0x299   :  { %1133 = vmatpush3.msra.mxu0 %v770_v29 }
 0x29a   :  { %1134 = vmatprep.subr.mxu0 %v1364_v0 }
 0x29b   :  { %1135 = vmatpush3.msra.mxu0 %v769_v30 }
 0x29c   :  { %1136 = vmatprep.subr.mxu0 %v1364_v0 }
 0x29d   :  { %1137 = vmatpush3.msra.mxu0 %v768_v31 }
 0x29e   :  { %1138 = vmatprep.subr.mxu0 %v1364_v0 }
 0x29f   :  { %1139 = vmatpush3.msra.mxu0 %v767_v32 }
 0x2a0   :  { %1140 = vmatprep.subr.mxu0 %v1364_v0 }
 0x2a1   :  { %1141 = vmatpush3.msra.mxu0 %v766_v58 }
 0x2a2   :  { %1142 = vmatprep.subr.mxu0 %v1364_v0 }
 0x2a3   :  { %1143 = vmatpush3.msra.mxu0 %v765_v59 }
 0x309   :  { %v499_v33 = vpop.xlane.xlu1 %498 }
 0x30a   :  { %v649_v34 = vmul.f32 8.0, %v499_v33 }
 0x30c   :  { %1200 = vrcp.f32 %v649_v34 }
 0x30d   :  { %v502_v35 = vpop.xlane.xlu1 %501 }
 0x30e   :  { %v650_v36 = vmul.f32 8.0, %v502_v35 }
 0x310   :  { %1202 = vrcp.f32 %v650_v36 }
 0x319   :  { %v1201_v37 = vpop.eup %1200 }
 0x31d   :  { %v1203_v42 = vpop.eup %1202 }
 0x33f   :  { %v572_v38 = vpop.f32.mrf.mxu0 }
 0x340   :  { %v653_v39 = vmul.f32 %v1201_v37, %v572_v38 }
 0x341   :  { %v1071_v40 = vpop.f32.mrf.mxu0 }
 0x342   :  { %v655_v41 = vrot.slane %v653_v39, 4 }
 0x343   :  { %v645_v43 = vpop.f32.mrf.mxu0 }
 0x344   :  { %v656_v44 = vadd.f32 %v655_v41, %v653_v39  ;;  %v654_v45 = vmul.f32 %v1203_v42, %v645_v43 }
 0x345   :  { %v1076_v46 = vpop.f32.mrf.mxu0 }
 0x346   :  { %v657_v47 = vrot.slane %v656_v44, 2  ;;  %v661_v48 = vrot.slane %v654_v45, 4 }
 0x348   :  { %v658_v49 = vadd.f32 %v657_v47, %v656_v44  ;;  %v662_v50 = vadd.f32 %v661_v48, %v654_v45 }
 0x34a   :  { %v663_v51 = vrot.slane %v662_v50, 2  ;;  %v659_v52 = vrot.slane %v658_v49, 1 }
 0x34c   :  { %v664_v53 = vadd.f32 %v663_v51, %v662_v50  ;;  %v660_v55 = vadd.f32 %v659_v52, %v658_v49 }
 0x34e   :  { %v665_v54 = vrot.slane %v664_v53, 1 }
 0x350   :  { %v666_v56 = vadd.f32 %v665_v54, %v664_v53 }
 0x352   :  { %v693_v57 = vsel %vm692_vm3, %v666_v56, %v660_v55 }
 0x353   :  { %1110 = vmatmul.mubr.f32.vlgmr.msra.gmra.mxu1 %v693_v57 }
 0x354   :  { %1179 = vmatprep.mubr.msk.f32.mxu1 %vm1365_vm1, %v1364_v0  ;;  %1148 = vmatpush3.msra.mxu1 %v874_v60 }
 0x355   :  { %1149 = vmatprep.subr.mxu1 %v1364_v0 }
 0x356   :  { %1150 = vmatpush3.msra.mxu1 %v873_v61 }
 0x357   :  { %1151 = vmatprep.subr.mxu1 %v1364_v0 }
 0x358   :  { %1152 = vmatpush3.msra.mxu1 %v872_v62 }
 0x359   :  { %1153 = vmatprep.subr.mxu1 %v1364_v0 }
 0x35a   :  { %1154 = vmatpush3.msra.mxu1 %v871_v63 }
 0x35b   :  { %1155 = vmatprep.subr.mxu1 %v1364_v0 }
 0x35c   :  { %1156 = vmatpush3.msra.mxu1 %v870_v1 }
 0x35d   :  { %1157 = vmatprep.subr.mxu1 %v1364_v0 }
 0x35e   :  { %1158 = vmatpush3.msra.mxu1 %v869_v2 }
 0x35f   :  { %1159 = vmatprep.subr.mxu1 %v1364_v0 }
 0x360   :  { %1160 = vmatpush3.msra.mxu1 %v868_v3 }
 0x361   :  { %1161 = vmatprep.subr.mxu1 %v1364_v0 }
 0x362   :  { %1162 = vmatpush3.msra.mxu1 %v867_v4 }
 0x363   :  { %1163 = vmatprep.subr.mxu1 %v1364_v0 }
 0x364   :  { %1164 = vmatpush3.msra.mxu1 %v866_v5 }
 0x365   :  { %1165 = vmatprep.subr.mxu1 %v1364_v0 }
 0x366   :  { %1166 = vmatpush3.msra.mxu1 %v865_v6 }
 0x367   :  { %1167 = vmatprep.subr.mxu1 %v1364_v0 }
 0x368   :  { %1168 = vmatpush3.msra.mxu1 %v864_v7 }
 0x369   :  { %1169 = vmatprep.subr.mxu1 %v1364_v0 }
 0x36a   :  { %1170 = vmatpush3.msra.mxu1 %v863_v8 }
 0x36b   :  { %1171 = vmatprep.subr.mxu1 %v1364_v0 }
 0x36c   :  { %1172 = vmatpush3.msra.mxu1 %v862_v9 }
 0x36d   :  { %1173 = vmatprep.subr.mxu1 %v1364_v0 }
 0x36e   :  { %1174 = vmatpush3.msra.mxu1 %v861_v14 }
 0x36f   :  { %1175 = vmatprep.subr.mxu1 %v1364_v0 }
 0x370   :  { %1176 = vmatpush3.msra.mxu1 %v860_v15 }
 0x371   :  { %1177 = vmatprep.subr.mxu1 %v1364_v0 }
 0x372   :  { %1178 = vmatpush3.msra.mxu1 %v859_v16 }
 0x413   :  { %v761_v11 = vpop.f32.mrf.mxu1 }
 0x414   :  { %v762_v12 = vadd.f32 %v978_v10, %v761_v11 }
 0x415   :  { %v1111_v13 = vpop.f32.mrf.mxu1 }
 0x416   :  { %1145 = vmatmul.mubr.f32.vlgmr.msra.gmra.mxu0 %v762_v12 }
 0x4d6   :  { %v854_v18 = vpop.f32.mrf.mxu0 }
 0x4d7   :  { %v855_v19 = vadd.f32 %v979_v17, %v854_v18 }
 0x4d8   :  { %v1146_v20 = vpop.f32.mrf.mxu0 }
 0x4d9   :  { %v858_v21 = vmax.f32 %v855_v19, 0.0 }
 0x4db   :  { %1180 = vmatmul.mubr.f32.vlgmr.msra.gmra.mxu1 %v858_v21 }
 0x59b   :  { %v948_v23 = vpop.f32.mrf.mxu1 }
 0x59c   :  { %v949_v24 = vadd.f32 %v980_v22, %v948_v23 }
 0x59d   :  { %v1181_v0 = vpop.f32.mrf.mxu1 }
 0x59e   :  { %952 = vst [vmem:[#allocation13] sm:$0x3] %v949_v24 }
 0x59f   :  { %1335 = shalt.err (!%p1332_p6)
}
 0x5a0   :  { %962 = dma.vmem_to_hbm [thread:$0]  %s960_s27, 32, %s1556_s10, [#allocation4]  }
 0x5a1   :  { %1352 = dma.done.wait [#allocation4], 32  }
 0x5a2   :  { %1353 = vsyncadd [#allocation4], 4294967264 }
 0x5a3   :  { %966 = vsyncpa [#allocation3], 1 }
 0x5a4   :  { %967 = vsyncpa [#allocation6], 1 }
 0x5a5   :  { %968 = vsyncpa [#allocation9], 1 }
 0x5a6   :  { %969 = vsyncpa [#allocation12], 1 }
 0x5a7   :  { %970 = vsyncpa [#allocation4], 1 }

</bundles_post_ra>
